<compile_context>
chip_gen: v6e
topology: v6e:2x2x1
jax: 0.10.0
libtpu: 0.0.40
codegen_flags: <defaults>
</compile_context>

<pallas_src>
import math

import jax
import jax.numpy as jnp
from jax import lax
from jax.experimental import pallas as pl
from jax.experimental.pallas import tpu as pltpu


def _layernorm(x, gamma, beta, eps=1e-6):
    # PyTorch nn.LayerNorm (eps=1e-6 per the module spec): biased variance over last dim.
    mu = jnp.mean(x, axis=-1, keepdims=True)
    var = jnp.mean((x - mu) ** 2, axis=-1, keepdims=True)
    return (x - mu) * lax.rsqrt(var + eps) * gamma + beta


# --------------------------------------------------------------------------------------
# Kernel 1: multi-head attention with fused per-head output projection.
# grid = (B, n_query_tiles, H); head axis is the (arbitrary) reduction axis.
# --------------------------------------------------------------------------------------
def _attn_kernel(xq_ref, xkv_ref, wq_ref, wk_ref, bk_ref, wv_ref, bv_ref, wo_ref,
                 attn_ref):
    h = pl.program_id(2)

    xq = xq_ref[0].astype(jnp.bfloat16)        # (TQ, D)
    xkv = xkv_ref[0].astype(jnp.bfloat16)      # (L,  D)

    # Per-head projections (contraction dim = D, MXU friendly).
    # 1/sqrt(E) is folded into wq in the wrapper -> no (L, L) score scaling.
    q = jnp.dot(xq, wq_ref[0], preferred_element_type=jnp.float32)               # (TQ, E)
    k = jnp.dot(xkv, wk_ref[0], preferred_element_type=jnp.float32) + bk_ref[0]  # (L,  E)
    v = jnp.dot(xkv, wv_ref[0], preferred_element_type=jnp.float32) + bv_ref[0]  # (L,  E)

    # Scores: contract on the last axis of both operands (no explicit transpose).
    s = lax.dot_general(q.astype(jnp.bfloat16), k.astype(jnp.bfloat16),
                        (((1,), (1,)), ((), ())),
                        preferred_element_type=jnp.float32)                       # (TQ, L)

    # Softmax in f32; normalize AFTER p@v (cheaper: (TQ,E) vs (TQ,L) multiplies).
    s = s - jnp.max(s, axis=-1, keepdims=True)
    p = jnp.exp(s)
    denom = jnp.sum(p, axis=-1, keepdims=True)

    o = jnp.dot(p.astype(jnp.bfloat16), v.astype(jnp.bfloat16),
                preferred_element_type=jnp.float32)                               # (TQ, E)
    o = o * pl.reciprocal(denom, approx=True)

    # Fused per-head slice of the output projection; accumulate over the head axis.
    part = jnp.dot(o.astype(jnp.bfloat16), wo_ref[0],
                   preferred_element_type=jnp.float32)                            # (TQ, D)

    @pl.when(h == 0)
    def _():
        attn_ref[0] = part

    @pl.when(h > 0)
    def _():
        attn_ref[0] = attn_ref[0] + part

    # TODO(synk): for very long L, tile K/V with online (flash-style) softmax instead of
    # holding the full (L, D) key/value block and (TQ, L) scores in VMEM.


# --------------------------------------------------------------------------------------
# Kernel 2: out-proj bias + residual + LN1, FFN streamed over d_ff, residual + LN2.
# grid = (B, n_l_tiles, n_ff_tiles); ff axis is the (arbitrary) reduction axis.
# --------------------------------------------------------------------------------------
def _ffn_kernel(x_ref, attn_ref, bo_ref, g1_ref, b1_ref,
                w1_ref, bb1_ref, w2_ref, bb2_ref, g2_ref, b2_ref,
                out_ref, out1_sc, acc_sc):
    ff = pl.program_id(2)

    @pl.when(ff == 0)
    def _():
        # dropout1 is identity (inference semantics)
        res = x_ref[0] + attn_ref[0] + bo_ref[...]
        out1_sc[...] = _layernorm(res, g1_ref[...], b1_ref[...])
        acc_sc[...] = jnp.zeros_like(acc_sc)

    # One d_ff tile: h1 chunk -> ReLU -> accumulate its contribution through W2.
    h1 = jnp.dot(out1_sc[...].astype(jnp.bfloat16), w1_ref[...],
                 preferred_element_type=jnp.float32) + bb1_ref[...]
    h1 = jnp.maximum(h1, 0.0)
    acc_sc[...] += jnp.dot(h1.astype(jnp.bfloat16), w2_ref[...],
                           preferred_element_type=jnp.float32)

    @pl.when(ff == pl.num_programs(2) - 1)
    def _():
        # dropout2 is identity (inference semantics)
        ffn_out = acc_sc[...] + bb2_ref[...]
        out_ref[0] = _layernorm(out1_sc[...] + ffn_out,
                                g2_ref[...], b2_ref[...]).astype(out_ref.dtype)


def encoder_layer(x, params, n_heads):
    B, L, D = x.shape
    H = n_heads
    assert D % H == 0, "d_model must be divisible by n_heads"
    E = D // H
    d_ff = params["w1"].shape[1]
    scale = 1.0 / math.sqrt(E)
    bf16 = jnp.bfloat16

    # ---- one-time (wrapper-side) repacking: per-head weights, bf16 MXU inputs ----
    wq_h = (params["wq"] * scale).reshape(D, H, E).transpose(1, 0, 2).astype(bf16)  # (H,D,E)
    wk_h = params["wk"].reshape(D, H, E).transpose(1, 0, 2).astype(bf16)            # (H,D,E)
    wv_h = params["wv"].reshape(D, H, E).transpose(1, 0, 2).astype(bf16)            # (H,D,E)
    bk_h = params["bk"].reshape(H, 1, E).astype(jnp.float32)                        # (H,1,E)
    bv_h = params["bv"].reshape(H, 1, E).astype(jnp.float32)                        # (H,1,E)
    wo_h = params["wo"].reshape(H, E, D).astype(bf16)                               # (H,E,D)
    w1 = params["w1"].astype(bf16)                                                  # (D,d_ff)
    w2 = params["w2"].astype(bf16)                                                  # (d_ff,D)

    # ---- tile sizes ----
    TQ = L if L <= 128 else (128 if L % 128 == 0 else L)      # query / row tile
    n_qt = L // TQ
    TFF = 128 if (d_ff % 128 == 0 and d_ff > 128) else d_ff   # d_ff reduction tile
    n_ff = d_ff // TFF

    vmem_limit = 64 * 1024 * 1024  # >= default scoped limit everywhere, <= physical on v7x

    # ---------------- call 1: attention ----------------
    attn = pl.pallas_call(
        _attn_kernel,
        out_shape=jax.ShapeDtypeStruct((B, L, D), jnp.float32),
        grid=(B, n_qt, H),
        in_specs=[
            pl.BlockSpec((1, TQ, D), lambda b, qt, h: (b, qt, 0)),   # x (query rows)
            pl.BlockSpec((1, L, D), lambda b, qt, h: (b, 0, 0)),     # x (keys/values)
            pl.BlockSpec((1, D, E), lambda b, qt, h: (h, 0, 0)),     # wq (per head, scaled)
            pl.BlockSpec((1, D, E), lambda b, qt, h: (h, 0, 0)),     # wk
            pl.BlockSpec((1, 1, E), lambda b, qt, h: (h, 0, 0)),     # bk
            pl.BlockSpec((1, D, E), lambda b, qt, h: (h, 0, 0)),     # wv
            pl.BlockSpec((1, 1, E), lambda b, qt, h: (h, 0, 0)),     # bv
            pl.BlockSpec((1, E, D), lambda b, qt, h: (h, 0, 0)),     # wo (per head rows)
        ],
        out_specs=pl.BlockSpec((1, TQ, D), lambda b, qt, h: (b, qt, 0)),
        compiler_params=pltpu.CompilerParams(
            dimension_semantics=("parallel", "parallel", "arbitrary"),
            vmem_limit_bytes=vmem_limit),
    )(x, x, wq_h, wk_h, bk_h, wv_h, bv_h, wo_h)

    # ---------------- call 2: residual + LN1 + FFN (streamed d_ff) + LN2 ----------------
    out = pl.pallas_call(
        _ffn_kernel,
        out_shape=jax.ShapeDtypeStruct((B, L, D), x.dtype),
        grid=(B, n_qt, n_ff),
        in_specs=[
            pl.BlockSpec((1, TQ, D), lambda b, lt, ff: (b, lt, 0)),  # x
            pl.BlockSpec((1, TQ, D), lambda b, lt, ff: (b, lt, 0)),  # attn (pre-bias)
            pl.BlockSpec((1, D), lambda b, lt, ff: (0, 0)),          # bo
            pl.BlockSpec((1, D), lambda b, lt, ff: (0, 0)),          # ln1 gamma
            pl.BlockSpec((1, D), lambda b, lt, ff: (0, 0)),          # ln1 beta
            pl.BlockSpec((D, TFF), lambda b, lt, ff: (0, ff)),       # w1 column tile
            pl.BlockSpec((1, TFF), lambda b, lt, ff: (0, ff)),       # b1 tile
            pl.BlockSpec((TFF, D), lambda b, lt, ff: (ff, 0)),       # w2 row tile
            pl.BlockSpec((1, D), lambda b, lt, ff: (0, 0)),          # b2 (ffn2 bias)
            pl.BlockSpec((1, D), lambda b, lt, ff: (0, 0)),          # ln2 gamma
            pl.BlockSpec((1, D), lambda b, lt, ff: (0, 0)),          # ln2 beta
        ],
        out_specs=pl.BlockSpec((1, TQ, D), lambda b, lt, ff: (b, lt, 0)),
        scratch_shapes=[pltpu.VMEM((TQ, D), jnp.float32),   # out1 (post-LN1), reused per ff step
                        pltpu.VMEM((TQ, D), jnp.float32)],  # FFN accumulator
        compiler_params=pltpu.CompilerParams(
            dimension_semantics=("parallel", "parallel", "arbitrary"),
            vmem_limit_bytes=vmem_limit),
    )(x, attn, params["bo"], params["g1"], params["b1"],
      w1, params["bb1"], w2, params["bb2"], params["g2"], params["b2"])

    return out


# --------------------------------------------------------------------------------------
# Pure-JAX f32 reference (matches the PyTorch EncoderLayer in eval mode).
# --------------------------------------------------------------------------------------
def reference_encoder_layer(x, params, n_heads):
    B, L, D = x.shape
    H = n_heads
    E = D // H
    q = (x @ params["wq"]).reshape(B, L, H, E)
    k = (x @ params["wk"] + params["bk"]).reshape(B, L, H, E)
    v = (x @ params["wv"] + params["bv"]).reshape(B, L, H, E)
    scores = jnp.einsum("blhe,bshe->bhls", q, k)
    attn = jax.nn.softmax(scores / math.sqrt(E), axis=-1)
    vo = jnp.einsum("bhls,bshd->blhd", attn, v).reshape(B, L, D)
    attn_out = vo @ params["wo"] + params["bo"]
    out1 = _layernorm(x + attn_out, params["g1"], params["b1"])
    h1 = jnp.maximum(out1 @ params["w1"] + params["bb1"], 0.0)
    ffn = h1 @ params["w2"] + params["bb2"]
    return _layernorm(out1 + ffn, params["g2"], params["b2"])


def make_params(key, d_model, d_ff):
    ks = jax.random.split(key, 11)
    s = 1.0 / math.sqrt(d_model)
    sf = 1.0 / math.sqrt(d_ff)
    # Weights stored as (in, out) so y = x @ W + b.
    return {
        "wq": jax.random.uniform(ks[0], (d_model, d_model), jnp.float32, -s, s),
        "wk": jax.random.uniform(ks[1], (d_model, d_model), jnp.float32, -s, s),
        "bk": jax.random.uniform(ks[2], (1, d_model), jnp.float32, -s, s),
        "wv": jax.random.uniform(ks[3], (d_model, d_model), jnp.float32, -s, s),
        "bv": jax.random.uniform(ks[4], (1, d_model), jnp.float32, -s, s),
        "wo": jax.random.uniform(ks[5], (d_model, d_model), jnp.float32, -s, s),
        "bo": jax.random.uniform(ks[6], (1, d_model), jnp.float32, -s, s),
        "g1": jnp.ones((1, d_model), jnp.float32),
        "b1": jnp.zeros((1, d_model), jnp.float32),
        "w1": jax.random.uniform(ks[7], (d_model, d_ff), jnp.float32, -s, s),
        "bb1": jax.random.uniform(ks[8], (1, d_ff), jnp.float32, -s, s),
        "w2": jax.random.uniform(ks[9], (d_ff, d_model), jnp.float32, -sf, sf),
        "bb2": jax.random.uniform(ks[10], (1, d_model), jnp.float32, -sf, sf),
        "g2": jnp.ones((1, d_model), jnp.float32),
        "b2": jnp.zeros((1, d_model), jnp.float32),
    }


if __name__ == "__main__":
    # Small but lane-friendly shapes: D is a multiple of 128 (lane-dense output blocks),
    # d_ff = 256 so the streamed-FFN path runs with 2 reduction tiles.
    B, L, d_model, n_heads, d_ff = 2, 16, 128, 4, 256
    key = jax.random.PRNGKey(0)
    kx, kp = jax.random.split(key)
    x = jax.random.normal(kx, (B, L, d_model), jnp.float32)
    params = make_params(kp, d_model, d_ff)

    out = encoder_layer(x, params, n_heads)
    out = jax.block_until_ready(out)

    ref = reference_encoder_layer(x, params, n_heads)
    assert out.shape == (B, L, d_model)
    max_err = jnp.max(jnp.abs(out - ref))
    # Tolerance loosened vs. pure-f32 because MXU inputs are bf16 (f32 accumulation) and
    # softmax uses the approximate EUP reciprocal; reductions/LayerNorm stay in f32.
    assert jnp.allclose(out, ref, atol=5e-2, rtol=5e-2), f"mismatch vs reference (max abs err {max_err})"

    # TODO(synk): dropout layers are treated as identity (inference mode); training-mode
    # dropout would use pltpu.prng_seed/prng_random_bits.
    print("KERNEL_OK")
</pallas_src>

<mosaic_0001>
module attributes {stable_mosaic.version = 11 : i64} {
  func.func @_attn_kernel(%arg0: i32, %arg1: i32, %arg2: i32, %arg3: memref<1x16x128xf32, #tpu.memory_space<vmem>>, %arg4: memref<1x16x128xf32, #tpu.memory_space<vmem>>, %arg5: memref<1x128x32xbf16, #tpu.memory_space<vmem>>, %arg6: memref<1x128x32xbf16, #tpu.memory_space<vmem>>, %arg7: memref<1x1x32xf32, #tpu.memory_space<vmem>>, %arg8: memref<1x128x32xbf16, #tpu.memory_space<vmem>>, %arg9: memref<1x1x32xf32, #tpu.memory_space<vmem>>, %arg10: memref<1x32x128xbf16, #tpu.memory_space<vmem>>, %arg11: memref<1x16x128xf32, #tpu.memory_space<vmem>>) attributes {dimension_semantics = [#tpu.dimension_semantics<parallel>, #tpu.dimension_semantics<parallel>, #tpu.dimension_semantics<arbitrary>], iteration_bounds = array<i64: 2, 1, 4>, scalar_prefetch = 0 : i64, scratch_operands = 0 : i64, tpu.core_type = #tpu.core_type<tc>, window_params = [{transform_indices = @transform_0, window_bounds = array<i64: 1, 16, 128>}, {transform_indices = @transform_1, window_bounds = array<i64: 1, 16, 128>}, {transform_indices = @transform_2, window_bounds = array<i64: 1, 128, 32>}, {transform_indices = @transform_3, window_bounds = array<i64: 1, 128, 32>}, {transform_indices = @transform_4, window_bounds = array<i64: 1, 1, 32>}, {transform_indices = @transform_5, window_bounds = array<i64: 1, 128, 32>}, {transform_indices = @transform_6, window_bounds = array<i64: 1, 1, 32>}, {transform_indices = @transform_7, window_bounds = array<i64: 1, 32, 128>}, {transform_indices = @transform_8, window_bounds = array<i64: 1, 16, 128>}]} {
    %c0 = arith.constant 0 : index
    %c0_0 = arith.constant 0 : index
    %c0_1 = arith.constant 0 : index
    %0 = vector.load %arg3[%c0, %c0_0, %c0_1] : memref<1x16x128xf32, #tpu.memory_space<vmem>>, vector<1x16x128xf32>
    %1 = vector.shape_cast %0 : vector<1x16x128xf32> to vector<16x128xf32>
    %2 = arith.truncf %1 : vector<16x128xf32> to vector<16x128xbf16>
    %c0_2 = arith.constant 0 : index
    %c0_3 = arith.constant 0 : index
    %c0_4 = arith.constant 0 : index
    %3 = vector.load %arg4[%c0_2, %c0_3, %c0_4] : memref<1x16x128xf32, #tpu.memory_space<vmem>>, vector<1x16x128xf32>
    %4 = vector.shape_cast %3 : vector<1x16x128xf32> to vector<16x128xf32>
    %5 = arith.truncf %4 : vector<16x128xf32> to vector<16x128xbf16>
    %c0_5 = arith.constant 0 : index
    %c0_6 = arith.constant 0 : index
    %c0_7 = arith.constant 0 : index
    %6 = vector.load %arg5[%c0_5, %c0_6, %c0_7] : memref<1x128x32xbf16, #tpu.memory_space<vmem>>, vector<1x128x32xbf16>
    %7 = vector.shape_cast %6 : vector<1x128x32xbf16> to vector<128x32xbf16>
    %cst = arith.constant dense<0.000000e+00> : vector<16x32xf32>
    %8 = tpu.matmul %2, %7, %cst {dimension_numbers = #tpu.dot_dimension_numbers<[1], [0], [0], [1], [0, 0, 1, 1], [], []>} : vector<16x128xbf16>, vector<128x32xbf16>, vector<16x32xf32> -> vector<16x32xf32>
    %c0_8 = arith.constant 0 : index
    %c0_9 = arith.constant 0 : index
    %c0_10 = arith.constant 0 : index
    %9 = vector.load %arg6[%c0_8, %c0_9, %c0_10] : memref<1x128x32xbf16, #tpu.memory_space<vmem>>, vector<1x128x32xbf16>
    %10 = vector.shape_cast %9 : vector<1x128x32xbf16> to vector<128x32xbf16>
    %cst_11 = arith.constant dense<0.000000e+00> : vector<16x32xf32>
    %11 = tpu.matmul %5, %10, %cst_11 {dimension_numbers = #tpu.dot_dimension_numbers<[1], [0], [0], [1], [0, 0, 1, 1], [], []>} : vector<16x128xbf16>, vector<128x32xbf16>, vector<16x32xf32> -> vector<16x32xf32>
    %c0_12 = arith.constant 0 : index
    %c0_13 = arith.constant 0 : index
    %c0_14 = arith.constant 0 : index
    %12 = vector.load %arg7[%c0_12, %c0_13, %c0_14] : memref<1x1x32xf32, #tpu.memory_space<vmem>>, vector<1x1x32xf32>
    %13 = vector.shape_cast %12 : vector<1x1x32xf32> to vector<1x32xf32>
    %14 = vector.broadcast %13 : vector<1x32xf32> to vector<16x32xf32>
    %15 = arith.addf %11, %14 : vector<16x32xf32>
    %c0_15 = arith.constant 0 : index
    %c0_16 = arith.constant 0 : index
    %c0_17 = arith.constant 0 : index
    %16 = vector.load %arg8[%c0_15, %c0_16, %c0_17] : memref<1x128x32xbf16, #tpu.memory_space<vmem>>, vector<1x128x32xbf16>
    %17 = vector.shape_cast %16 : vector<1x128x32xbf16> to vector<128x32xbf16>
    %cst_18 = arith.constant dense<0.000000e+00> : vector<16x32xf32>
    %18 = tpu.matmul %5, %17, %cst_18 {dimension_numbers = #tpu.dot_dimension_numbers<[1], [0], [0], [1], [0, 0, 1, 1], [], []>} : vector<16x128xbf16>, vector<128x32xbf16>, vector<16x32xf32> -> vector<16x32xf32>
    %c0_19 = arith.constant 0 : index
    %c0_20 = arith.constant 0 : index
    %c0_21 = arith.constant 0 : index
    %19 = vector.load %arg9[%c0_19, %c0_20, %c0_21] : memref<1x1x32xf32, #tpu.memory_space<vmem>>, vector<1x1x32xf32>
    %20 = vector.shape_cast %19 : vector<1x1x32xf32> to vector<1x32xf32>
    %21 = vector.broadcast %20 : vector<1x32xf32> to vector<16x32xf32>
    %22 = arith.addf %18, %21 : vector<16x32xf32>
    %23 = arith.truncf %8 : vector<16x32xf32> to vector<16x32xbf16>
    %24 = arith.truncf %15 : vector<16x32xf32> to vector<16x32xbf16>
    %cst_22 = arith.constant dense<0.000000e+00> : vector<16x16xf32>
    %25 = tpu.matmul %23, %24, %cst_22 {dimension_numbers = #tpu.dot_dimension_numbers<[1], [1], [0], [0], [0, 0, 1, 0], [], []>} : vector<16x32xbf16>, vector<16x32xbf16>, vector<16x16xf32> -> vector<16x16xf32>
    %cst_23 = arith.constant dense<0xFF800000> : vector<16xf32>
    %26 = vector.multi_reduction <maximumf>, %25, %cst_23 [1] : vector<16x16xf32> to vector<16xf32>
    %27 = vector.shape_cast %26 : vector<16xf32> to vector<16x1xf32>
    %28 = vector.broadcast %27 : vector<16x1xf32> to vector<16x16xf32>
    %29 = arith.subf %25, %28 : vector<16x16xf32>
    %30 = math.exp %29 : vector<16x16xf32>
    %cst_24 = arith.constant dense<0.000000e+00> : vector<16xf32>
    %31 = vector.multi_reduction <add>, %30, %cst_24 [1] : vector<16x16xf32> to vector<16xf32>
    %32 = vector.shape_cast %31 : vector<16xf32> to vector<16x1xf32>
    %33 = arith.truncf %30 : vector<16x16xf32> to vector<16x16xbf16>
    %34 = arith.truncf %22 : vector<16x32xf32> to vector<16x32xbf16>
    %cst_25 = arith.constant dense<0.000000e+00> : vector<16x32xf32>
    %35 = tpu.matmul %33, %34, %cst_25 {dimension_numbers = #tpu.dot_dimension_numbers<[1], [0], [0], [1], [0, 0, 1, 1], [], []>} : vector<16x16xbf16>, vector<16x32xbf16>, vector<16x32xf32> -> vector<16x32xf32>
    %36 = tpu.reciprocal %32 {approx = true} : vector<16x1xf32> -> vector<16x1xf32>
    %37 = vector.broadcast %36 : vector<16x1xf32> to vector<16x32xf32>
    %38 = arith.mulf %35, %37 : vector<16x32xf32>
    %39 = arith.truncf %38 : vector<16x32xf32> to vector<16x32xbf16>
    %c0_26 = arith.constant 0 : index
    %c0_27 = arith.constant 0 : index
    %c0_28 = arith.constant 0 : index
    %40 = vector.load %arg10[%c0_26, %c0_27, %c0_28] : memref<1x32x128xbf16, #tpu.memory_space<vmem>>, vector<1x32x128xbf16>
    %41 = vector.shape_cast %40 : vector<1x32x128xbf16> to vector<32x128xbf16>
    %cst_29 = arith.constant dense<0.000000e+00> : vector<16x128xf32>
    %42 = tpu.matmul %39, %41, %cst_29 {dimension_numbers = #tpu.dot_dimension_numbers<[1], [0], [0], [1], [0, 0, 1, 1], [], []>} : vector<16x32xbf16>, vector<32x128xbf16>, vector<16x128xf32> -> vector<16x128xf32>
    %c0_i32 = arith.constant 0 : i32
    %43 = arith.cmpi eq, %arg2, %c0_i32 : i32
    %44 = arith.extui %43 : i1 to i32
    %c0_i32_30 = arith.constant 0 : i32
    %45 = arith.cmpi ne, %44, %c0_i32_30 : i32
    scf.if %45 {
      %c0_33 = arith.constant 0 : index
      %c0_34 = arith.constant 0 : index
      %c0_35 = arith.constant 0 : index
      %49 = vector.load %arg11[%c0_33, %c0_34, %c0_35] : memref<1x16x128xf32, #tpu.memory_space<vmem>>, vector<1x16x128xf32>
      %50 = vector.shape_cast %49 : vector<1x16x128xf32> to vector<16x128xf32>
      %51 = vector.shape_cast %42 : vector<16x128xf32> to vector<1x16x128xf32>
      tpu.vector_store %arg11[%c0_33, %c0_34, %c0_35], %51 {strides = array<i32>} : memref<1x16x128xf32, #tpu.memory_space<vmem>>, vector<1x16x128xf32>,
    } else {
    }
    %c0_i32_31 = arith.constant 0 : i32
    %46 = arith.cmpi sgt, %arg2, %c0_i32_31 : i32
    %47 = arith.extui %46 : i1 to i32
    %c0_i32_32 = arith.constant 0 : i32
    %48 = arith.cmpi ne, %47, %c0_i32_32 : i32
    scf.if %48 {
      %c0_33 = arith.constant 0 : index
      %c0_34 = arith.constant 0 : index
      %c0_35 = arith.constant 0 : index
      %49 = vector.load %arg11[%c0_33, %c0_34, %c0_35] : memref<1x16x128xf32, #tpu.memory_space<vmem>>, vector<1x16x128xf32>
      %50 = vector.shape_cast %49 : vector<1x16x128xf32> to vector<16x128xf32>
      %51 = arith.addf %50, %42 : vector<16x128xf32>
      %c0_36 = arith.constant 0 : index
      %c0_37 = arith.constant 0 : index
      %c0_38 = arith.constant 0 : index
      %52 = vector.load %arg11[%c0_36, %c0_37, %c0_38] : memref<1x16x128xf32, #tpu.memory_space<vmem>>, vector<1x16x128xf32>
      %53 = vector.shape_cast %52 : vector<1x16x128xf32> to vector<16x128xf32>
      %54 = vector.shape_cast %51 : vector<16x128xf32> to vector<1x16x128xf32>
      tpu.vector_store %arg11[%c0_36, %c0_37, %c0_38], %54 {strides = array<i32>} : memref<1x16x128xf32, #tpu.memory_space<vmem>>, vector<1x16x128xf32>,
    } else {
    }
    return
  }
  func.func @transform_0(%arg0: i32, %arg1: i32, %arg2: i32) -> (i32, i32, i32) {
    %c0_i32 = arith.constant 0 : i32
    %c0_i32_0 = arith.constant 0 : i32
    return %arg0, %arg1, %c0_i32 : i32, i32, i32
  }
  func.func @transform_1(%arg0: i32, %arg1: i32, %arg2: i32) -> (i32, i32, i32) {
    %c0_i32 = arith.constant 0 : i32
    %c0_i32_0 = arith.constant 0 : i32
    %c0_i32_1 = arith.constant 0 : i32
    return %arg0, %c0_i32, %c0_i32_0 : i32, i32, i32
  }
  func.func @transform_2(%arg0: i32, %arg1: i32, %arg2: i32) -> (i32, i32, i32) {
    %c0_i32 = arith.constant 0 : i32
    %c0_i32_0 = arith.constant 0 : i32
    %c0_i32_1 = arith.constant 0 : i32
    return %arg2, %c0_i32, %c0_i32_0 : i32, i32, i32
  }
  func.func @transform_3(%arg0: i32, %arg1: i32, %arg2: i32) -> (i32, i32, i32) {
    %c0_i32 = arith.constant 0 : i32
    %c0_i32_0 = arith.constant 0 : i32
    %c0_i32_1 = arith.constant 0 : i32
    return %arg2, %c0_i32, %c0_i32_0 : i32, i32, i32
  }
  func.func @transform_4(%arg0: i32, %arg1: i32, %arg2: i32) -> (i32, i32, i32) {
    %c0_i32 = arith.constant 0 : i32
    %c0_i32_0 = arith.constant 0 : i32
    %c0_i32_1 = arith.constant 0 : i32
    return %arg2, %c0_i32, %c0_i32_0 : i32, i32, i32
  }
  func.func @transform_5(%arg0: i32, %arg1: i32, %arg2: i32) -> (i32, i32, i32) {
    %c0_i32 = arith.constant 0 : i32
    %c0_i32_0 = arith.constant 0 : i32
    %c0_i32_1 = arith.constant 0 : i32
    return %arg2, %c0_i32, %c0_i32_0 : i32, i32, i32
  }
  func.func @transform_6(%arg0: i32, %arg1: i32, %arg2: i32) -> (i32, i32, i32) {
    %c0_i32 = arith.constant 0 : i32
    %c0_i32_0 = arith.constant 0 : i32
    %c0_i32_1 = arith.constant 0 : i32
    return %arg2, %c0_i32, %c0_i32_0 : i32, i32, i32
  }
  func.func @transform_7(%arg0: i32, %arg1: i32, %arg2: i32) -> (i32, i32, i32) {
    %c0_i32 = arith.constant 0 : i32
    %c0_i32_0 = arith.constant 0 : i32
    %c0_i32_1 = arith.constant 0 : i32
    return %arg2, %c0_i32, %c0_i32_0 : i32, i32, i32
  }
  func.func @transform_8(%arg0: i32, %arg1: i32, %arg2: i32) -> (i32, i32, i32) {
    %c0_i32 = arith.constant 0 : i32
    %c0_i32_0 = arith.constant 0 : i32
    return %arg0, %arg1, %c0_i32 : i32, i32, i32
  }
}

</mosaic_0001>

<bundles_post_ra>
// kernel: tpu_custom_call.1
= control target key start
LH: loop header
LB: loop body
LE: loop exit
PB: predicated region body
PF: predicated region fallthrough
CT: control target
= control target key end

     0   :  { %s1861_s0 = inlined_call_operand.vmem [shape: f32[2,16,128], index: 0, kind: input, shape index: {}]   ;;  %s1862_s1 = inlined_call_operand.vmem [shape: f32[2,16,128], index: 1, kind: input, shape index: {}]   ;;  %s1863_s2 = inlined_call_operand.vmem [shape: bf16[4,128,32], index: 2, kind: input, shape index: {}]   ;;  %s1864_s3 = inlined_call_operand.vmem [shape: bf16[4,128,32], index: 3, kind: input, shape index: {}]   ;;  %s1865_s4 = inlined_call_operand.vmem [shape: f32[4,1,32], index: 4, kind: input, shape index: {}]   ;;  %s1866_s5 = inlined_call_operand.vmem [shape: bf16[4,128,32], index: 5, kind: input, shape index: {}]   ;;  %s1867_s6 = inlined_call_operand.vmem [shape: f32[4,1,32], index: 6, kind: input, shape index: {}]   ;;  %s1868_s7 = inlined_call_operand.vmem [shape: bf16[4,32,128], index: 7, kind: input, shape index: {}]   ;;  %s1869_s8 = inlined_call_operand.hbm [shape: f32[2,16,128], index: 8, kind: output, shape index: {}]  }
   0x1   :  { %1871 = sst [smem:[#allocation5_spill]] %s1863_s2 }
   0x2   :  { %1872 = sst [smem:[#allocation6_spill]] %s1864_s3 }
   0x3   :  { %1873 = sst [smem:[#allocation7_spill]] %s1866_s5 }
   0x4   :  { %13 = vsyncpa [#allocation3], 0 }
   0x5   :  { %15 = vsyncpa [#allocation3 + $0x1], 0  ;;  %s1611_s27 = smov 0   ;;  %s1613_s28 = smov 0  }
   0x6   :  { %s1615_s29 = smov 0   ;;  %s1617_s30 = smov 0  }
   0x7   :  { %s1619_s9 = smov 0   ;;  %s1621_s10 = smov 0  }
   0x8   :  { %s1623_s11 = smov 0   ;;  %s1625_s12 = smov 0  }
   0x9 LB: > { %s1181_s13 = sadd.s32 4294967295, %s1559_s12   ;;  %s1182_s14 = sadd.s32 4294967294, %s1559_s12   ;;  %s1559_s12 = sphi %s1625_s12, %s21_s12   ;;  %s1555_s11 = sphi %s1623_s11, %s1886_s11   ;;  %s1551_s10 = sphi %s1621_s10, %s1885_s10   ;;  %s1547_s9 = sphi %s1619_s9, %s1884_s9   ;;  %s1543_s30 = sphi %s1617_s30, %s1883_s30   ;;  %s1539_s29 = sphi %s1615_s29, %s1882_s29   ;;  %s1535_s28 = sphi %s1613_s28, %s1881_s28   ;;  %s1531_s27 = sphi %s1611_s27, %s1880_s27  }
   0xa   : > { %s33_s15 = sadd.s32 1, %s1551_s10  ;;  %s40_s16 = sadd.s32 1, %s1555_s11 }
   0xb   : > { %p34_p0 = scmp.ge.s32.totalorder %s33_s15, 4  ;;  %p269_p1 = scmp.ne.s32.totalorder %s1539_s29, %s1535_s28 }
   0xc   : > { %p270_p2 = scmp.eq.s32.totalorder %s1181_s13, 7  ;;  %p275_p4 = scmp.ne.s32.totalorder %s1535_s28, %s1531_s27 }
   0xd   : > { %s1888_s15 = smov (%p34_p0, %s33_s15), 0  ;;  %s1890_s16 = smov (!%p34_p0, %s40_s16), %s1555_s11 }
   0xe   : > { %p1660_p3 = por %p270_p2, %p269_p1  ;;  %p42_p5 = scmp.ge.s32.totalorder %s1890_s16, 2 }
   0xf   : > { %p276_p6 = scmp.eq.s32.totalorder %s1182_s14, 7  ;;  %p1185_p7 = scmp.ge.s32.totalorder %s1559_s12, 1 }
  0x10   : > { %p359_p8 = scmp.lt.s32.totalorder %s1559_s12, 9  ;;  %s1892_s16 = smov (%p42_p5, %s1890_s16), 0 }
  0x11   : > { %p1670_p9 = por %p276_p6, %p275_p4  ;;  %s254_s19 = ssub.s32 %s1555_s11, %s1892_s16 }
  0x12   : > { %p360_p10 = pnand %p1185_p7, %p359_p8  ;;  %s259_s20 = sadd.s32 1, %s1539_s29 }
  0x13   : > { %p257_p11 = scmp.eq.s32.totalorder %s254_s19, 0  ;;  %p443_p12 = scmp.lt.s32.totalorder (!%p360_p10), %s1543_s30, 3 }
  0x14   : > { %363 = sbr.rel (%p360_p10) target bundleno = 1063 (0x427), region = 52  ;;  %s1870_s22 = sand.u32 (!%p360_p10), 1, %s1535_s28  }
  0x15   : > { %s1678_s21 = scalar_select %p257_p11, %s1539_s29, %s259_s20  }
  0x16   : > { %s1685_s23 = sshll.u32 (!%p360_p10), %s1870_s22, 4  ;;  %s1876_s3 = sld [smem:[#allocation6_spill]] (!%p360_p10) }
  0x17   : > { %s1877_s2 = sld [smem:[#allocation5_spill]] (!%p360_p10)  ;;  %p429_p13 = scmp.lt.s32.totalorder (!%p360_p10), %s1547_s9, 1 }
  0x18   : > { %s1878_s5 = sld [smem:[#allocation7_spill]] (!%p360_p10)  ;;  %p1230_p0 = scmp.ne.s32.totalorder (!%p360_p10), %s1543_s30, 0 }
  0x19   : > { %v1561_v0 = vmov 0.0   ;;  %s1689_s24 = scalar_select %p443_p12, %s1543_s30, 3  ;;  %vm1562_vm0 = vmmov 0   ;;  %vm808_vm1 = vcmask 261120   ;;  %vm856_vm2 = vcmask 130048  }
  0x1a   : > { %1298 = vmatprep.subr.bf16.mxu1 %v1561_v0  ;;  %1278 = vmatprep.subr.bf16.mxu0 %v1561_v0  ;;  %s430_s26 = scalar_select %p429_p13, %s1547_s9, 1 }
  0x1b   : > { %1314 = vmatprep.mubr.msk.bf16.mxu1 %vm1562_vm0, %v1561_v0  ;;  %1294 = vmatprep.mubr.msk.bf16.mxu0 %vm1562_vm0, %v1561_v0  ;;  %s1239_s25 = sshll.u32 %s1689_s24, 6 }
  0x1c   : > { %s1699_s14 = scalar_lea.vmem %s1876_s3, %s1239_s25 }
  0x1d   : > { %v1433_v1 = vld [vmem:[%s1699_s14 + $0x38] sm:$0xff]   ;;  %s1705_s22 = scalar_lea.vmem %s1877_s2, %s1239_s25  ;;  %v1434_v2 = vld [vmem:[%s1699_s14 + $0x30] sm:$0xff]   ;;  %v1436_v5 = vld [vmem:[%s1699_s14 + $0x28] sm:$0xff]   ;;  %s1237_s2 = sshll.u32 %s430_s26, 4 }
  0x1e   : > { %1299 = vmatpush3.bf16.msra.mxu1 %v1433_v1  ;;  %v1435_v3 = vld [vmem:[%s1705_s22 + $0x38] sm:$0xff]   ;;  %v1437_v4 = vld [vmem:[%s1705_s22 + $0x30] sm:$0xff]   ;;  %v1439_v6 = vld [vmem:[%s1705_s22 + $0x28] sm:$0xff]   ;;  %s1727_s20 = scalar_lea.vmem %s1878_s5, %s1239_s25  ;;  %s442_s19 = scalar_lea.vmem %s1862_s1, %s1237_s2 }
  0x1f   : > { %1300 = vmatprep.subr.bf16.mxu1 %v1561_v0  ;;  %1279 = vmatpush3.bf16.msra.mxu0 %v1435_v3  ;;  %v1438_v7 = vld [vmem:[%s1699_s14 + $0x20] sm:$0xff]   ;;  %v1440_v9 = vld [vmem:[%s1699_s14 + $0x18] sm:$0xff]   ;;  %v1442_v11 = vld [vmem:[%s1699_s14 + $0x10] sm:$0xff]   ;;  %s436_s5 = scalar_lea.vmem %s1861_s0, %s1237_s2  ;;  %s1242_s25 = sshll.u32 %s1689_s24, 4 }
  0x20   : > { %1280 = vmatprep.subr.bf16.mxu0 %v1561_v0  ;;  %v1441_v8 = vld [vmem:[%s1705_s22 + $0x20] sm:$0xff]   ;;  %v1443_v10 = vld [vmem:[%s1705_s22 + $0x18] sm:$0xff]   ;;  %v1445_v12 = vld [vmem:[%s1705_s22 + $0x10] sm:$0xff]   ;;  %s468_s26 = scalar_lea.vmem %s1868_s7, %s1242_s25 }
  0x21   : > { %v1444_v13 = vld [vmem:[%s1699_s14 + $0x8] sm:$0xff]   ;;  %v1446_v15 = vld [vmem:[%s1699_s14] sm:$0xff]   ;;  %v1449_v23 = vld [vmem:[%s1727_s20 + $0x38] sm:$0xff]  }
  0x22   : > { %1301 = vmatpush3.bf16.msra.mxu1 %v1434_v2  ;;  %v1447_v14 = vld [vmem:[%s1705_s22 + $0x8] sm:$0xff]   ;;  %v474_v16 = vld [vmem:[%s442_s19] sm:$0xff]  ;;  %v1450_v24 = vld [vmem:[%s1727_s20 + $0x30] sm:$0xff]  }
  0x23   : > { %1302 = vmatprep.subr.bf16.mxu1 %v1561_v0  ;;  %1281 = vmatpush3.bf16.msra.mxu0 %v1437_v4  ;;  %v475_v17 = vld [vmem:[%s442_s19 + $0x8] sm:$0xff]  ;;  %v1448_v18 = vld [vmem:[%s1705_s22] sm:$0xff]   ;;  %v1453_v27 = vld [vmem:[%s1727_s20 + $0x18] sm:$0xff]  }
  0x24   : > { %1282 = vmatprep.subr.bf16.mxu0 %v1561_v0  ;;  %v471_v19 = vld [vmem:[%s436_s5] sm:$0xff]  ;;  %v472_v20 = vld [vmem:[%s436_s5 + $0x8] sm:$0xff]  ;;  %v476_v21 = vpack.c.bf16 %v475_v17, %v474_v16  ;;  %v1454_v28 = vld [vmem:[%s1727_s20 + $0x10] sm:$0xff]   ;;  %s455_s5 = scalar_lea.vmem %s1865_s4, %s1689_s24 }
  0x25   : > { %v473_v22 = vpack.c.bf16 %v472_v20, %v471_v19  ;;  %v1451_v25 = vld [vmem:[%s1727_s20 + $0x28] sm:$0xff]   ;;  %v1452_v26 = vld [vmem:[%s1727_s20 + $0x20] sm:$0xff]  }
  0x26   : > { %1303 = vmatpush3.bf16.msra.mxu1 %v1436_v5  ;;  %v1455_v29 = vld [vmem:[%s1727_s20 + $0x8] sm:$0xff]   ;;  %v1456_v30 = vld [vmem:[%s1727_s20] sm:$0xff]   ;;  %s463_s20 = scalar_lea.vmem %s1867_s6, %s1689_s24  ;;  %s427_s24 = scalar_lea.vmem [#allocation2], %s1685_s23 }
  0x27   : > { %1304 = vmatprep.subr.bf16.mxu1 %v1561_v0  ;;  %1283 = vmatpush3.bf16.msra.mxu0 %v1439_v6  ;;  %v1207_v32 = vld [vmem:[%s455_s5] ss:$0 sm:$0xff] }
  0x28   : > { %1284 = vmatprep.subr.bf16.mxu0 %v1561_v0  ;;  %v1216_v52 = vld [vmem:[%s463_s20] ss:$0 sm:$0xff] }
  0x2a   : > { %1305 = vmatpush3.bf16.msra.mxu1 %v1438_v7  ;;  %v1457_v7 = vld [vmem:[%s468_s26 + $0x8] sm:$0xff]  }
  0x2b   : > { %1306 = vmatprep.subr.bf16.mxu1 %v1561_v0  ;;  %1285 = vmatpush3.bf16.msra.mxu0 %v1441_v8  ;;  %v1458_v8 = vld [vmem:[%s468_s26] sm:$0xff]  }
  0x2c   : > { %1286 = vmatprep.subr.bf16.mxu0 %v1561_v0 }
  0x2e   : > { %1307 = vmatpush3.bf16.msra.mxu1 %v1440_v9 }
  0x2f   : > { %1308 = vmatprep.subr.bf16.mxu1 %v1561_v0  ;;  %1287 = vmatpush3.bf16.msra.mxu0 %v1443_v10 }
  0x30   : > { %1288 = vmatprep.subr.bf16.mxu0 %v1561_v0 }
  0x32   : > { %1309 = vmatpush3.bf16.msra.mxu1 %v1442_v11 }
  0x33   : > { %1310 = vmatprep.subr.bf16.mxu1 %v1561_v0  ;;  %1289 = vmatpush3.bf16.msra.mxu0 %v1445_v12 }
  0x34   : > { %1290 = vmatprep.subr.bf16.mxu0 %v1561_v0 }
  0x36   : > { %1311 = vmatpush3.bf16.msra.mxu1 %v1444_v13 }
  0x37   : > { %1312 = vmatprep.subr.bf16.mxu1 %v1561_v0  ;;  %1291 = vmatpush3.bf16.msra.mxu0 %v1447_v14 }
  0x38   : > { %1292 = vmatprep.subr.bf16.mxu0 %v1561_v0 }
  0x3a   : > { %1313 = vmatpush3.bf16.msra.mxu1 %v1446_v15 }
  0x3b   : > { %1338 = vmatprep.subr.bf16.mxu1 %v1561_v0  ;;  %1293 = vmatpush3.bf16.msra.mxu0 %v1448_v18 }
  0x3c   : > { %1318 = vmatprep.subr.bf16.mxu0 %v1561_v0 }
  0x3d   : > { %1315 = vmatmul.mubr.bf16.vlgmr.msra.gmra.mxu1 %v476_v21 }
  0x3e   : > { %1340 = vmatprep.mubr.msk.bf16.mxu1 %vm1562_vm0, %v1561_v0  ;;  %1295 = vmatmul.mubr.bf16.vlgmr.msra.gmra.mxu0 %v473_v22 }
  0x3f   : > { %1334 = vmatprep.mubr.msk.bf16.mxu0 %vm1562_vm0, %v1561_v0  ;;  %1319 = vmatpush3.bf16.msra.mxu0 %v1449_v23 }
  0x40   : > { %1320 = vmatprep.subr.bf16.mxu0 %v1561_v0 }
  0x43   : > { %1321 = vmatpush3.bf16.msra.mxu0 %v1450_v24 }
  0x44   : > { %1322 = vmatprep.subr.bf16.mxu0 %v1561_v0 }
  0x47   : > { %1323 = vmatpush3.bf16.msra.mxu0 %v1451_v25 }
  0x48   : > { %1324 = vmatprep.subr.bf16.mxu0 %v1561_v0 }
  0x4b   : > { %1325 = vmatpush3.bf16.msra.mxu0 %v1452_v26 }
  0x4c   : > { %1326 = vmatprep.subr.bf16.mxu0 %v1561_v0 }
  0x4f   : > { %1327 = vmatpush3.bf16.msra.mxu0 %v1453_v27 }
  0x50   : > { %1328 = vmatprep.subr.bf16.mxu0 %v1561_v0 }
  0x53   : > { %1329 = vmatpush3.bf16.msra.mxu0 %v1454_v28 }
  0x54   : > { %1330 = vmatprep.subr.bf16.mxu0 %v1561_v0 }
  0x57   : > { %1331 = vmatpush3.bf16.msra.mxu0 %v1455_v29 }
  0x58   : > { %1332 = vmatprep.subr.bf16.mxu0 %v1561_v0 }
  0x5b   : > { %1333 = vmatpush3.bf16.msra.mxu0 %v1456_v30 }
  0x5e   : > { %1335 = vmatmul.mubr.bf16.vlgmr.msra.gmra.mxu0 %v476_v21 }
  0xfd   : > { %v687_v31 = vpop.f32.mrf.mxu1 }
  0xfe   : > { %v575_v34 = vpop.f32.mrf.mxu0  ;;  %v688_v37 = vadd.f32 %v1207_v32, %v687_v31 }
  0xff   : > { %v1316_v33 = vpop.f32.mrf.mxu1 }
 0x100   : > { %v1296_v36 = vpop.f32.mrf.mxu0 }
 0x101   : > { %v690_v35 = vpop.f32.mrf.mxu1 }
 0x102   : > { %v691_v38 = vadd.f32 %v1207_v32, %v690_v35  ;;  %v578_v40 = vpop.f32.mrf.mxu0 }
 0x103   : > { %v1317_v39 = vpop.f32.mrf.mxu1  ;;  %v806_v44 = vpack.c.bf16 %v578_v40, %v575_v34 }
 0x104   : > { %v807_v41 = vpack.c.bf16 %v691_v38, %v688_v37  ;;  %v1297_v42 = vpop.f32.mrf.mxu0 }
 0x106   : > { %v813_v43 = vsel %vm808_vm1, %v807_v41, 0 }
 0x107   : > { %1339 = vmatpush3.bf16.xpose.msra.mxu1 %v813_v43 }
 0x108   : > { %1344 = vmatprep.subr.bf16.mxu1 %v1561_v0 }
 0x10e   : > { %1341 = vmatmul.mubr.msk.bf16.vlgmr.msra.gmra.mxu1 %vm808_vm1, %v806_v44 }
 0x10f   : > { %1346 = vmatprep.mubr.msk.bf16.mxu1 %vm1562_vm0, %v1561_v0 }
 0x11e   : > { %v799_v51 = vpop.f32.mrf.mxu0 }
 0x11f   : > { %v800_v54 = vadd.f32 %v1216_v52, %v799_v51 }
 0x120   : > { %v1336_v53 = vpop.f32.mrf.mxu0 }
 0x122   : > { %v802_v55 = vpop.f32.mrf.mxu0 }
 0x123   : > { %v803_v56 = vadd.f32 %v1216_v52, %v802_v55 }
 0x124   : > { %v1337_v57 = vpop.f32.mrf.mxu0 }
 0x125   : > { %v876_v58 = vpack.c.bf16 %v803_v56, %v800_v54 }
 0x127   : > { %1345 = vmatpush3.bf16.msra.mxu1 %v876_v58 }
 0x128   : > { %1350 = vmatprep.subr.bf16.mxu1 %v1561_v0 }
 0x1ce   : > { %v849_v45 = vpop.f32.mrf.mxu1 }
 0x1cf   : > { %v857_v46 = vsel %vm856_vm2, %v849_v45, -inf }
 0x1d0   : > { %858 = vmax.xlane.f32.xlu0 %v857_v46  ;;  %v1342_v47 = vpop.f32.mrf.mxu1 }
 0x1d2   : > { %v852_v48 = vpop.f32.mrf.mxu1 }
 0x1d3   : > { %v860_v49 = vsel %vm856_vm2, %v852_v48, -inf }
 0x1d4   : > { %861 = vmax.xlane.f32.xlu0 %v860_v49  ;;  %v1343_v50 = vpop.f32.mrf.mxu1 }
 0x259   : > { %v859_v59 = vpop.xlane.xlu0 %858 }
 0x25a   : > { %v863_v60 = vsub.f32 %v849_v45, %v859_v59 }
 0x25c   : > { %v865_v61 = vmul.f32 1.442695, %v863_v60 }
 0x25d   : > { %v862_v62 = vpop.xlane.xlu0 %861 }
 0x25e   : > { %1459 = vpow2.f32 %v865_v61  ;;  %v864_v63 = vsub.f32 %v852_v48, %v862_v62 }
 0x260   : > { %v867_v1 = vmul.f32 1.442695, %v864_v63 }
 0x262   : > { %1461 = vpow2.f32 %v867_v1 }
 0x26b   : > { %v1460_v2 = vpop.eup %1459 }
 0x26c   : > { %v869_v3 = vsel %vm856_vm2, %v1460_v2, 0.0 }
 0x26d   : > { %870 = vadd.xlane.f32.xlu1 %v869_v3 }
 0x26f   : > { %v1462_v4 = vpop.eup %1461 }
 0x270   : > { %v872_v5 = vsel %vm856_vm2, %v1462_v4, 0.0  ;;  %v875_v6 = vpack.c.bf16 %v1462_v4, %v1460_v2 }
 0x271   : > { %873 = vadd.xlane.f32.xlu1 %v872_v5 }
 0x272   : > { %1347 = vmatmul.mubr.msk.bf16.vlgmr.msra.gmra.mxu1 %vm856_vm2, %v875_v6 }
 0x273   : > { %1354 = vmatprep.mubr.msk.bf16.mxu1 %vm1562_vm0, %v1561_v0  ;;  %1351 = vmatpush3.bf16.msra.mxu1 %v1457_v7 }
 0x274   : > { %1352 = vmatprep.subr.bf16.mxu1 %v1561_v0 }
 0x277   : > { %1353 = vmatpush3.bf16.msra.mxu1 %v1458_v8 }
 0x2f6   : > { %v871_v9 = vpop.xlane.xlu1 %870 }
 0x2f7   : > { %1463 = vrcp.f32 %v871_v9 }
 0x2fa   : > { %v874_v10 = vpop.xlane.xlu1 %873 }
 0x2fb   : > { %1465 = vrcp.f32 %v874_v10 }
 0x304   : > { %v1464_v13 = vpop.eup %1463 }
 0x308   : > { %v1466_v14 = vpop.eup %1465 }
 0x332   : > { %v914_v11 = vpop.f32.mrf.mxu1 }
 0x333   : > { %v923_v16 = vmul.f32 %v1464_v13, %v914_v11 }
 0x334   : > { %v1348_v12 = vpop.f32.mrf.mxu1 }
 0x336   : > { %v917_v15 = vpop.f32.mrf.mxu1 }
 0x337   : > { %v924_v17 = vmul.f32 %v1466_v14, %v917_v15 }
 0x338   : > { %v1349_v18 = vpop.f32.mrf.mxu1 }
 0x339   : > { %v925_v19 = vpack.c.bf16 %v924_v17, %v923_v16 }
 0x33b   : > { %1355 = vmatmul.mubr.msk.bf16.vlgmr.msra.gmra.mxu1 %vm808_vm1, %v925_v19 }
 0x3fb   : > { %v979_v20 = vpop.f32.mrf.mxu1 }
 0x3fd   : > { %v1356_v0 = vpop.f32.mrf.mxu1  ;;  %989 = sbr.rel (%p1230_p0) target bundleno = 1027 (0x403), region = 56 }
 0x3ff   : > { %v982_v21 = vpop.f32.mrf.mxu1 }
 0x401   : > { %v1357_v22 = vpop.f32.mrf.mxu1 }
 0x402   : > { %990 = vst [vmem:[%s427_s24] sm:$0xff] %v979_v20  ;;  %991 = vst [vmem:[%s427_s24 + $0x8] sm:$0xff] %v982_v21 }
 0x403 PF: > { %p1231_p1 = scmp.le.s32.totalorder %s1543_s30, 0 }
 0x405   : > { %995 = sbr.rel (%p1231_p1) target bundleno = 1038 (0x40e), region = 60 }
 0x40a   : > { %v996_v23 = vld [vmem:[%s427_s24] sm:$0xff]  ;;  %v997_v24 = vld [vmem:[%s427_s24 + $0x8] sm:$0xff] }
 0x40b   : > { %v998_v25 = vadd.f32 %v996_v23, %v979_v20  ;;  %v999_v26 = vadd.f32 %v997_v24, %v982_v21 }
 0x40d   : > { %1000 = vst [vmem:[%s427_s24] sm:$0xff] %v998_v25  ;;  %1001 = vst [vmem:[%s427_s24 + $0x8] sm:$0xff] %v999_v26 }
 0x40e PF: > { %s1243_s23 = sshll.u32 %s1547_s9, 8  ;;  %s1018_s22 = sshll.u32 %s427_s24, 4  ;;  %s1806_s22 = int_to_ptr.vmem [resolvable:$true] %s1018_s22 }
 0x40f   : > { %s1804_s5 = scalar_lea.hbm %s1869_s8, %s1243_s23  ;;  %s1879_s30 = sand.u32 1, %s1535_s28  }
 0x410   : > { %s1810_s14 = scalar_lea.sflag [#allocation3], %s1879_s30  ;;  %s1467_s20 = scalar_lea.vmem %s1806_s22, 256 }
 0x411   : > { %p1468_p2 = scmp.ne.s32.totalorder %s1806_s22, %s1467_s20  ;;  %s1563_s9 = smov [#allocation2]  }
 0x412   : > { %s1471_s25 = sshll.u32 %s1563_s9, 4  ;;  %s1472_s25 = int_to_ptr.vmem [resolvable:$false] %s1471_s25 }
 0x413   : > { %p1469_p4 = pnand %p1468_p2, %p1660_p3  ;;  %s1473_s13 = scalar_lea.vmem %s1472_s25, 512 }
 0x414   : > { %p1474_p6 = scmp.lt.s32.totalorder %s1806_s22, %s1472_s25  ;;  %p1475_p7 = scmp.lt.s32.totalorder %s1473_s13, %s1467_s20 }
 0x415   : > { %p1470_p5 = pneg %p1469_p4 }
 0x416   : > { %p1476_p8 = por %p1475_p7, %p1474_p6 }
 0x418   : > { %p1477_p10 = pnand %p1476_p8, %p1470_p5 }
 0x41a   : > { %1480 = shalt.err (!%p1477_p10)
}
 0x41b   : > { %s1481_s19 = scalar_lea.hbm %s1804_s5, 256  ;;  %s1485_s23 = scalar_lea.hbm %s1869_s8, 512 }
 0x41c   : > { %p1482_p11 = scmp.ne.s32.totalorder %s1804_s5, %s1481_s19  ;;  %p1486_p0 = scmp.lt.s32.totalorder %s1804_s5, %s1869_s8 }
 0x41d   : > { %p1487_p1 = scmp.lt.s32.totalorder %s1485_s23, %s1481_s19 }
 0x41e   : > { %p1483_p12 = pnand %p1482_p11, %p1660_p3 }
 0x41f   : > { %p1488_p2 = por %p1487_p1, %p1486_p0 }
 0x420   : > { %p1484_p13 = pneg %p1483_p12 }
 0x422   : > { %p1489_p4 = pnand %p1488_p2, %p1484_p13 }
 0x424   : > { %1492 = shalt.err (!%p1489_p4)
}
 0x425   : > { %s1564_s30 = smov 128   ;;  %s1565_s20 = smov 8  }
 0x426   : > { %1358 = dma.vmem_to_hbm [thread:$0]  (%p1660_p3), %s1806_s22, 256, %s1804_s5, %s1810_s14, %s1564_s30, %s1564_s30, %s1565_s20  }
 0x427 PF: > { %p1364_p5 = scmp.ge.s32.totalorder %s1559_s12, 2  ;;  %s1033_s9 = sand.u32 1, %s1531_s27  }
 0x428   : > { %s1034_s25 = scalar_lea.sflag [#allocation3], %s1033_s9 }
 0x429   : > { %p1361_p6 = pnand %p1364_p5, %p1670_p9 }
 0x42b   : > { %p1362_p7 = pneg %p1361_p6 }
 0x42d   : > { %1526 = dma.done.wait (%p1362_p7), %s1034_s25, 256  }
 0x42e   : > { %1528 = vsyncadd (%p1362_p7), %s1034_s25, 4294967040  ;;  %s21_s12 = sadd.s32 1, %s1559_s12   ;;  %s1880_s27 = smov %s1535_s28 }
 0x42f   : > { %p18_p8 = scmp.ge.s32.totalorder %s21_s12, 10   ;;  %s1881_s28 = smov %s1539_s29 }
 0x430   : > { %s1882_s29 = smov %s1678_s21  ;;  %s1883_s30 = smov %s1551_s10 }
 0x431   : > { %s1884_s9 = smov %s1555_s11  ;;  %s1885_s10 = smov %s1888_s15 }
 0x432   : > { %s1886_s11 = smov %s1892_s16  ;;  %20 = sbr.rel (!%p18_p8) target bundleno = 9 (0x9), region = 116 }
 0x437   :  { %1039 = vsyncpa [#allocation3], 1 }
 0x438   :  { %1041 = vsyncpa [#allocation3 + $0x1], 1 }

</bundles_post_ra>
